<compile_context>
chip_gen: v5e
topology: v5e:2x2
jax: 0.10.0
libtpu: 0.0.40
codegen_flags: <defaults>
</compile_context>

<pallas_src>
import functools

import jax
import jax.numpy as jnp
from jax.experimental import pallas as pl
from jax.experimental.pallas import tpu as pltpu


def _round_up(a: int, m: int) -> int:
    return (a + m - 1) // m * m


# ---- Chip-aware VMEM budget (v5e/v6e: 128 MiB physical, v7x: 64 MiB). ------
try:
    _VMEM_CAP = int(pltpu.get_tpu_info().vmem_capacity_bytes)
except Exception:  # conservative fallback if the query is unavailable
    _VMEM_CAP = 64 * 1024 * 1024
_VMEM_LIMIT = min((_VMEM_CAP * 7) // 8, 96 * 1024 * 1024)   # handed to Mosaic
_VMEM_BUDGET = min((_VMEM_CAP * 3) // 4, _VMEM_LIMIT - 8 * 1024 * 1024)


# ---------------------------------------------------------------------------
# Kernels
# ---------------------------------------------------------------------------
def _fused_kernel(x_ref, w_ref, b_ref, o_ref):
    # H is already a multiple of 128: output block is lane-dense as-is.
    x = x_ref[...]
    y = jnp.dot(x.astype(jnp.bfloat16), w_ref[...],
                preferred_element_type=jnp.float32)
    # Single fused f32 VPU expression: bias broadcast + residual add.
    o_ref[...] = (y + b_ref[...] + x).astype(o_ref.dtype)


def _fused_kernel_lane_padded(x_ref, w_ref, b_ref, o_ref, xpad_ref, *, h):
    # Output columns padded to a multiple of 128 (lane-dense stores).  The
    # residual x (width h < padded width) is widened into the padded lane
    # range via a VMEM scratch so the add stays fully in-kernel and in f32.
    x = x_ref[...]                               # (tm, h) f32
    y = jnp.dot(x.astype(jnp.bfloat16), w_ref[...],
                preferred_element_type=jnp.float32)   # (tm, Hp) f32
    xpad_ref[...] = jnp.zeros_like(xpad_ref)     # cheap VMEM fill, VPU slack
    xpad_ref[:, :h] = x                          # static sub-lane store
    o_ref[...] = (y + b_ref[...] + xpad_ref[...]).astype(o_ref.dtype)


def _tiled_kernel(xk_ref, w_ref, b_ref, xr_ref, o_ref, acc_ref):
    # Large-H path: grid (M/tm, H/tn, H/tk), reduction axis (k) last.
    k = pl.program_id(2)

    @pl.when(k == 0)
    def _():
        acc_ref[...] = jnp.zeros_like(acc_ref)

    acc_ref[...] += jnp.dot(xk_ref[...].astype(jnp.bfloat16), w_ref[...],
                            preferred_element_type=jnp.float32)

    @pl.when(k == pl.num_programs(2) - 1)
    def _():
        o_ref[...] = (acc_ref[...] + b_ref[...] + xr_ref[...]).astype(o_ref.dtype)


# ---------------------------------------------------------------------------
# Wrapper
# ---------------------------------------------------------------------------
@functools.partial(jax.jit, static_argnames=("tm_target",))
def residual_linear(x, w, b, *, tm_target: int = 1024):
    """Residual(Linear): returns x @ W + b + x.  x: [B,S,H], w: [H,H], b: [H]."""
    B, S, H = x.shape
    M = B * S
    x2 = x.reshape(M, H).astype(jnp.float32)
    w_bf16 = w.astype(jnp.bfloat16)              # halve weight DMA, feed MXU
    b_f32 = b.astype(jnp.float32)

    min_steps = 4   # give v7x's two TensorCores something to split

    # ------------- Large-H path: N/K tiled with f32 VMEM accumulator --------
    if H >= 2048 and H % 256 == 0:
        tn = tk = 256   # MXU-native on v6e/v7x; multiple of v5e's 128 granule
        tm = min(tm_target, _round_up(M, 8))
        tm = min(tm, max(8, _round_up(pl.cdiv(M, min_steps), 8)))
        tm = max(8, _round_up(tm, 8))

        def _tiled_bytes(t):
            return (2 * t * tk * 4        # x K-block (double-buffered)
                    + 2 * t * tn * 4      # x residual N-block (double-buffered)
                    + 2 * tk * tn * 2     # weight tile (double-buffered)
                    + 2 * tn * 4          # bias tile
                    + 2 * t * tn * 4      # out tile (double-buffered)
                    + t * tn * 4)         # f32 accumulator scratch
        while tm > 8 and _tiled_bytes(tm) > _VMEM_BUDGET:
            tm //= 2
        tm = max(8, _round_up(tm, 8))

        grid = (pl.cdiv(M, tm), H // tn, H // tk)
        cost = pl.CostEstimate(
            flops=int(2 * M * H * H), transcendentals=0,
            bytes_accessed=int(M * H * 4 * (1 + H // tn)
                               + H * H * 2 * pl.cdiv(M, tm)
                               + M * H * 4 + H * 4))

        out = pl.pallas_call(
            _tiled_kernel,
            out_shape=jax.ShapeDtypeStruct((M, H), x.dtype),
            grid_spec=pltpu.PrefetchScalarGridSpec(
                num_scalar_prefetch=0,
                grid=grid,
                in_specs=[
                    pl.BlockSpec((tm, tk), lambda i, j, k: (i, k)),  # x (matmul K)
                    pl.BlockSpec((tk, tn), lambda i, j, k: (k, j)),  # weight tile
                    pl.BlockSpec((1, tn), lambda i, j, k: (0, j)),   # bias tile
                    pl.BlockSpec((tm, tn), lambda i, j, k: (i, j)),  # x (residual N)
                ],
                out_specs=pl.BlockSpec((tm, tn), lambda i, j, k: (i, j)),
                scratch_shapes=(pltpu.VMEM((tm, tn), jnp.float32),),
            ),
            compiler_params=pltpu.CompilerParams(
                dimension_semantics=("parallel", "parallel", "arbitrary"),
                vmem_limit_bytes=_VMEM_LIMIT,
            ),
            cost_estimate=cost,
        )(x2, w_bf16, b_f32.reshape(1, H), x2)
        return out.reshape(B, S, H)

    # ------------- Small/medium-H path: weight fully VMEM-resident ----------
    Hp = _round_up(H, 128)            # lane-dense output width
    needs_pad = Hp != H
    if needs_pad:
        # One-time padding of the *weights only* (no extra HBM pass over x).
        w_bf16 = jnp.pad(w_bf16, ((0, 0), (0, Hp - H)))
        b_pad = jnp.pad(b_f32, (0, Hp - H)).reshape(1, Hp)
    else:
        b_pad = b_f32.reshape(1, Hp)

    # Row-tile selection: sublane-aligned, >= min_steps grid steps when M
    # allows, shrunk to fit the chip's VMEM budget.  Resident weight/bias are
    # counted twice (Pallas double-buffers every input by default).
    tm = min(tm_target, _round_up(M, 8))
    tm = min(tm, max(8, _round_up(pl.cdiv(M, min_steps), 8)))
    tm = max(8, _round_up(tm, 8))
    resident = 2 * (H * Hp * 2) + 2 * (Hp * 4)

    def _tile_bytes(t):
        bts = 2 * t * H * 4 + 2 * t * Hp * 4     # x tile + out tile (double-buffered)
        if needs_pad:
            bts += t * Hp * 4                    # residual-widening scratch
        return bts

    while tm > 8 and resident + _tile_bytes(tm) > _VMEM_BUDGET:
        tm //= 2
    tm = max(8, _round_up(tm, 8))

    # Partial last M-block (if any) is masked on store; rows are independent.
    grid = (pl.cdiv(M, tm),)

    cost = pl.CostEstimate(
        flops=int(2 * M * H * Hp), transcendentals=0,
        bytes_accessed=int(M * H * 4 + M * Hp * 4 + H * Hp * 2 + Hp * 4))

    if needs_pad:
        kernel = functools.partial(_fused_kernel_lane_padded, h=H)
        scratch_shapes = (pltpu.VMEM((tm, Hp), jnp.float32),)
    else:
        kernel = _fused_kernel
        scratch_shapes = ()

    out = pl.pallas_call(
        kernel,
        out_shape=jax.ShapeDtypeStruct((M, Hp), x.dtype),
        grid_spec=pltpu.PrefetchScalarGridSpec(
            num_scalar_prefetch=0,
            grid=grid,
            in_specs=[
                pl.BlockSpec((tm, H), lambda i: (i, 0)),    # x row tile
                pl.BlockSpec((H, Hp), lambda i: (0, 0)),    # weight, VMEM-resident
                pl.BlockSpec((1, Hp), lambda i: (0, 0)),    # bias, VMEM-resident
            ],
            out_specs=pl.BlockSpec((tm, Hp), lambda i: (i, 0)),
            scratch_shapes=scratch_shapes,
        ),
        compiler_params=pltpu.CompilerParams(
            dimension_semantics=("parallel",),   # rows independent -> split on v7x
            vmem_limit_bytes=_VMEM_LIMIT,
        ),
        cost_estimate=cost,
    )(x2, w_bf16, b_pad)

    if needs_pad:
        out = out[:, :H]
    return out.reshape(B, S, H)


if __name__ == "__main__":
    B, S, H = 2, 8, 32
    key = jax.random.PRNGKey(0)
    kx, kw, kb = jax.random.split(key, 3)

    x = jax.random.normal(kx, (B, S, H), dtype=jnp.float32)
    # Deterministic "Linear" params (Kaiming-ish scale like torch's default).
    w = jax.random.uniform(kw, (H, H), dtype=jnp.float32,
                           minval=-1.0, maxval=1.0) / jnp.sqrt(H)
    b = jax.random.uniform(kb, (H,), dtype=jnp.float32,
                           minval=-1.0, maxval=1.0) / jnp.sqrt(H)

    out = residual_linear(x, w, b)
    jax.block_until_ready(out)

    # Reference for fn(x) + x.  The kernel feeds bf16 operands to the MXU with
    # f32 accumulation (residual + bias stay f32), so round the matmul
    # operands identically for the check.
    xb = x.astype(jnp.bfloat16).astype(jnp.float32)
    wb = w.astype(jnp.bfloat16).astype(jnp.float32)
    ref = jnp.einsum("bsh,hk->bsk", xb, wb,
                     precision=jax.lax.Precision.HIGHEST) + b + x
    assert out.shape == x.shape
    assert jnp.allclose(out, ref, atol=2e-3, rtol=2e-3), "mismatch vs reference"

    print("KERNEL_OK")
</pallas_src>

<mosaic_0001>
module attributes {stable_mosaic.version = 11 : i64} {
  func.func @_fused_kernel_lane_padded(%arg0: i32, %arg1: memref<8x32xf32, #tpu.memory_space<vmem>>, %arg2: memref<32x128xbf16, #tpu.memory_space<vmem>>, %arg3: memref<1x128xf32, #tpu.memory_space<vmem>>, %arg4: memref<8x128xf32, #tpu.memory_space<vmem>>, %arg5: memref<8x128xf32, #tpu.memory_space<vmem>>) attributes {dimension_semantics = [#tpu.dimension_semantics<parallel>], iteration_bounds = array<i64: 2>, scalar_prefetch = 0 : i64, scratch_operands = 1 : i64, tpu.core_type = #tpu.core_type<tc>, window_params = [{transform_indices = @transform_0, window_bounds = array<i64: 8, 32>}, {pipeline_mode = #tpu.pipeline_mode<synchronous>, transform_indices = @transform_1, window_bounds = array<i64: 32, 128>}, {pipeline_mode = #tpu.pipeline_mode<synchronous>, transform_indices = @transform_2, window_bounds = array<i64: 1, 128>}, {transform_indices = @transform_3, window_bounds = array<i64: 8, 128>}]} {
    %c0 = arith.constant 0 : index
    %c0_0 = arith.constant 0 : index
    %0 = vector.load %arg1[%c0, %c0_0] : memref<8x32xf32, #tpu.memory_space<vmem>>, vector<8x32xf32>
    %1 = arith.truncf %0 : vector<8x32xf32> to vector<8x32xbf16>
    %c0_1 = arith.constant 0 : index
    %c0_2 = arith.constant 0 : index
    %2 = vector.load %arg2[%c0_1, %c0_2] : memref<32x128xbf16, #tpu.memory_space<vmem>>, vector<32x128xbf16>
    %cst = arith.constant dense<0.000000e+00> : vector<8x128xf32>
    %3 = tpu.matmul %1, %2, %cst {dimension_numbers = #tpu.dot_dimension_numbers<[1], [0], [0], [1], [0, 0, 1, 1], [], []>} : vector<8x32xbf16>, vector<32x128xbf16>, vector<8x128xf32> -> vector<8x128xf32>
    %cst_3 = arith.constant 0.000000e+00 : f32
    %4 = vector.broadcast %cst_3 : f32 to vector<8x128xf32>
    %c0_4 = arith.constant 0 : index
    %c0_5 = arith.constant 0 : index
    %5 = vector.load %arg5[%c0_4, %c0_5] : memref<8x128xf32, #tpu.memory_space<vmem>>, vector<8x128xf32>
    tpu.vector_store %arg5[%c0_4, %c0_5], %4 {strides = array<i32>} : memref<8x128xf32, #tpu.memory_space<vmem>>, vector<8x128xf32>,
    %c0_6 = arith.constant 0 : index
    %c0_7 = arith.constant 0 : index
    %6 = vector.load %arg5[%c0_6, %c0_7] : memref<8x128xf32, #tpu.memory_space<vmem>>, vector<8x32xf32>
    tpu.vector_store %arg5[%c0_6, %c0_7], %0 {strides = array<i32>} : memref<8x128xf32, #tpu.memory_space<vmem>>, vector<8x32xf32>,
    %c0_8 = arith.constant 0 : index
    %c0_9 = arith.constant 0 : index
    %7 = vector.load %arg3[%c0_8, %c0_9] : memref<1x128xf32, #tpu.memory_space<vmem>>, vector<1x128xf32>
    %8 = vector.broadcast %7 : vector<1x128xf32> to vector<8x128xf32>
    %9 = arith.addf %3, %8 : vector<8x128xf32>
    %c0_10 = arith.constant 0 : index
    %c0_11 = arith.constant 0 : index
    %10 = vector.load %arg5[%c0_10, %c0_11] : memref<8x128xf32, #tpu.memory_space<vmem>>, vector<8x128xf32>
    %11 = arith.addf %9, %10 : vector<8x128xf32>
    %c0_12 = arith.constant 0 : index
    %c0_13 = arith.constant 0 : index
    %12 = vector.load %arg4[%c0_12, %c0_13] : memref<8x128xf32, #tpu.memory_space<vmem>>, vector<8x128xf32>
    tpu.vector_store %arg4[%c0_12, %c0_13], %11 {strides = array<i32>} : memref<8x128xf32, #tpu.memory_space<vmem>>, vector<8x128xf32>,
    return
  }
  func.func @transform_0(%arg0: i32) -> (i32, i32) {
    %c0_i32 = arith.constant 0 : i32
    %c0_i32_0 = arith.constant 0 : i32
    return %arg0, %c0_i32 : i32, i32
  }
  func.func @transform_1(%arg0: i32) -> (i32, i32) {
    %c0_i32 = arith.constant 0 : i32
    %c0_i32_0 = arith.constant 0 : i32
    %c0_i32_1 = arith.constant 0 : i32
    return %c0_i32, %c0_i32_0 : i32, i32
  }
  func.func @transform_2(%arg0: i32) -> (i32, i32) {
    %c0_i32 = arith.constant 0 : i32
    %c0_i32_0 = arith.constant 0 : i32
    %c0_i32_1 = arith.constant 0 : i32
    return %c0_i32, %c0_i32_0 : i32, i32
  }
  func.func @transform_3(%arg0: i32) -> (i32, i32) {
    %c0_i32 = arith.constant 0 : i32
    %c0_i32_0 = arith.constant 0 : i32
    return %arg0, %c0_i32 : i32, i32
  }
}

</mosaic_0001>

<bundles_post_ra>
// kernel: residual_linear.1
= control target key start
LH: loop header
LB: loop body
LE: loop exit
PB: predicated region body
PF: predicated region fallthrough
CT: control target
= control target key end

     0   :  { %s323_s12 = smov 0   ;;  %s349_s0 = inlined_call_operand.vmem [shape: f32[16,32], index: 0, kind: input, shape index: {}]   ;;  %s350_s1 = inlined_call_operand.vmem [shape: bf16[32,128], index: 1, kind: input, shape index: {}]   ;;  %s351_s2 = inlined_call_operand.vmem [shape: f32[1,128], index: 2, kind: input, shape index: {}]   ;;  %s352_s3 = inlined_call_operand.vmem [shape: f32[16,128], index: 3, kind: output, shape index: {}]  }
   0x1 LB: > { %s264_s13 = sadd.s32 4294967295, %s300_s12   ;;  %p268_p0 = scmp.ge.s32.totalorder %s300_s12, 1  ;;  %s300_s12 = sphi %s323_s12, %s13_s12  }
   0x2   : > { %p136_p1 = scmp.lt.s32.totalorder %s300_s12, 3 }
   0x4   : > { %p137_p2 = pnand %p268_p0, %p136_p1 }
   0x5   : > { %p158_p3 = scmp.lt.s32.totalorder (!%p137_p2), %s264_s13, 1 }
   0x6   : > { %140 = sbr.rel (%p137_p2) target bundleno = 153 (0x99), region = 32 }
   0xb   : > { %v283_v0 = vld [vmem:[%s350_s1 + $0x8] sm:$0xff]  ;;  %v302_v1 = vmov 0.0   ;;  %v282_v2 = vld [vmem:[%s350_s1] sm:$0xff]  ;;  %s354_s13 = smov (!%p158_p3, %s264_s13), 1  ;;  %vm174_vm0 = vcmask 261120  }
   0xc   : > { %173 = vst [vmem:[#allocation2] sm:$0xff] %v302_v1  ;;  %201 = vmatpush.bf16.msra.mxu0 %v283_v0  ;;  %s269_s18 = sshll.u32 %s354_s13, 3  ;;  %v293_v5 = vld [vmem:[%s351_s2] ss:$0 sm:$0xff] }
   0xd   : > { %s161_s21 = scalar_lea.vmem %s349_s0, %s269_s18  ;;  %s165_s26 = scalar_lea.vmem %s352_s3, %s269_s18 }
   0xe   : > { %v167_v3 = vld [vmem:[%s161_s21] sm:$0xff] }
   0xf   : > { %v168_v4 = vpack.c.bf16 %v167_v3, %v167_v3  ;;  %175 = vst.msk [vmem:[#allocation2] sm:$0xff] %vm174_vm0, %v167_v3 }
  0x10   : > { %202 = vmatpush.bf16.msra.mxu0 %v282_v2 }
  0x13   : > { %279 = vmatmul.msk.bf16.vlgmr.msra.gmra.mxu0 %vm174_vm0, %v168_v4 }
  0x16   : > { %v208_v7 = vld [vmem:[#allocation2] sm:$0xff] }
  0x90   : > { %v204_v6 = vpop.f32.mrf.mxu0 }
  0x91   : > { %v205_v8 = vadd.f32 %v293_v5, %v204_v6 }
  0x93   : > { %v209_v9 = vadd.f32 %v208_v7, %v205_v8 }
  0x95   : > { %210 = vst [vmem:[%s165_s26] sm:$0xff] %v209_v9 }
  0x98   : > { %v206_v10 = vpop.f32.mrf.mxu0 }
  0x99 PF: > { %s13_s12 = sadd.s32 1, %s300_s12  }
  0x9a   : > { %p10_p4 = scmp.ge.s32.totalorder %s13_s12, 4  }
  0x9c   :  { %12 = sbr.rel (!%p10_p4) target bundleno = 1 (0x1), region = 62 }

</bundles_post_ra>
